<compile_context>
chip_gen: v7x
topology: tpu7x:2x2x1
jax: 0.10.0
libtpu: 0.0.40
codegen_flags: <defaults>
</compile_context>

<pallas_src>
import jax
import jax.numpy as jnp
from jax.experimental import pallas as pl
from jax.experimental.pallas import tpu as pltpu


def _linear_sigmoid_kernel(b_ref, x_ref, w_ref, o_ref):
    # b_ref : (1,)      SMEM  (scalar-prefetched bias)
    # x_ref : (IN, TB)  VMEM  (batch in lanes -> lane-dense compute)
    # w_ref : (IN, 1)   VMEM  (resident across all batch tiles)
    # o_ref : (1, TB)   VMEM  (lane-dense output -> unmasked vst)
    x = x_ref[...]
    if x.dtype != jnp.float32:          # v5e: no native bf16 VPU/EUP
        x = x.astype(jnp.float32)
    w = w_ref[...]                      # (IN, 1), broadcasts over lanes
    # VPU elementwise multiply + XLU sublane reduce (keep the MXU out of it:
    # OUT == 1 would waste 127/128 of the systolic array).
    y = jnp.sum(x * w, axis=0, keepdims=True) + b_ref[0]   # (1, TB) f32
    o_ref[...] = jax.nn.sigmoid(y).astype(o_ref.dtype)


def linear_sigmoid(x, weight, bias, *, max_tile_b=512):
    """sigmoid(x @ weight.T + bias) with weight: (1, IN), bias: (1,)."""
    B, IN = x.shape
    OUT, IN_w = weight.shape
    assert IN == IN_w and OUT == 1

    # Lane-dense staging: batch goes into the lane (last) dimension.
    x_t = jnp.transpose(x)                               # (IN, B)
    w_t = jnp.transpose(weight).astype(jnp.float32)      # (IN, 1)
    b_1d = bias.reshape(OUT).astype(jnp.float32)         # (1,)  -> SMEM

    # Pad batch up to a multiple of the lane tile (>=128 so stores are unmasked).
    tile_b = min(max_tile_b, pl.cdiv(B, 128) * 128)
    b_pad = pl.cdiv(B, tile_b) * tile_b
    if b_pad != B:
        x_t = jnp.pad(x_t, ((0, 0), (0, b_pad - B)))
    grid = (b_pad // tile_b,)

    cost = pl.CostEstimate(
        flops=2 * b_pad * IN,
        transcendentals=b_pad,
        bytes_accessed=(b_pad * IN + IN * OUT + OUT + b_pad * OUT) * 4,
    )

    y_t = pl.pallas_call(
        _linear_sigmoid_kernel,
        out_shape=jax.ShapeDtypeStruct((OUT, b_pad), x.dtype),
        grid_spec=pltpu.PrefetchScalarGridSpec(
            num_scalar_prefetch=1,                        # bias -> SMEM scalar
            grid=grid,
            in_specs=[
                pl.BlockSpec((IN, tile_b), lambda i, b: (0, i)),  # x batch tile
                pl.BlockSpec((IN, OUT),   lambda i, b: (0, 0)),   # w resident
            ],
            out_specs=pl.BlockSpec((OUT, tile_b), lambda i, b: (0, i)),
        ),
        compiler_params=pltpu.CompilerParams(
            dimension_semantics=("parallel",),            # 2 TCs on v7x
        ),
        cost_estimate=cost,
    )(b_1d, x_t, w_t)

    # Back to the PyTorch layout (B, 1), dropping batch padding.
    return jnp.transpose(y_t[:, :B])


if __name__ == "__main__":
    key = jax.random.PRNGKey(0)
    kx, kw, kb = jax.random.split(key, 3)

    IN_FEATURES = 4 * 8   # 32
    OUT_FEATURES = 1
    BATCH = 1             # module spec: x1 = torch.randn(1, 32)

    x1 = jax.random.normal(kx, (BATCH, IN_FEATURES), dtype=jnp.float32)
    weight = jax.random.normal(kw, (OUT_FEATURES, IN_FEATURES), dtype=jnp.float32) * 0.1
    bias = jax.random.normal(kb, (OUT_FEATURES,), dtype=jnp.float32) * 0.1

    y = linear_sigmoid(x1, weight, bias)
    y = jax.block_until_ready(y)

    # Plain-JAX reference
    y_ref = jax.nn.sigmoid(x1 @ weight.T + bias[None, :])
    assert y.shape == (BATCH, OUT_FEATURES)
    assert jnp.allclose(y, y_ref, atol=1e-5), (y, y_ref)

    print("KERNEL_OK")
</pallas_src>

<mosaic_0001>
module attributes {stable_mosaic.version = 11 : i64} {
  func.func @_linear_sigmoid_kernel(%arg0: i32, %arg1: memref<1xf32, #tpu.memory_space<smem>>, %arg2: memref<32x128xf32, #tpu.memory_space<vmem>>, %arg3: memref<32x1xf32, #tpu.memory_space<vmem>>, %arg4: memref<1x128xf32, #tpu.memory_space<vmem>>) attributes {dimension_semantics = [#tpu.dimension_semantics<parallel>], iteration_bounds = array<i64: 1>, scalar_prefetch = 1 : i64, scratch_operands = 0 : i64, tpu.core_type = #tpu.core_type<tc>, window_params = [{transform_indices = @transform_0, window_bounds = array<i64: 32, 128>}, {pipeline_mode = #tpu.pipeline_mode<synchronous>, transform_indices = @transform_1, window_bounds = array<i64: 32, 1>}, {transform_indices = @transform_2, window_bounds = array<i64: 1, 128>}]} {
    %c0 = arith.constant 0 : index
    %c0_0 = arith.constant 0 : index
    %0 = vector.load %arg2[%c0, %c0_0] : memref<32x128xf32, #tpu.memory_space<vmem>>, vector<32x128xf32>
    %c0_1 = arith.constant 0 : index
    %c0_2 = arith.constant 0 : index
    %1 = vector.load %arg3[%c0_1, %c0_2] : memref<32x1xf32, #tpu.memory_space<vmem>>, vector<32x1xf32>
    %2 = vector.broadcast %1 : vector<32x1xf32> to vector<32x128xf32>
    %3 = arith.mulf %0, %2 : vector<32x128xf32>
    %cst = arith.constant dense<0.000000e+00> : vector<128xf32>
    %4 = vector.multi_reduction <add>, %3, %cst [0] : vector<32x128xf32> to vector<128xf32>
    %5 = vector.shape_cast %4 : vector<128xf32> to vector<1x128xf32>
    %c0_3 = arith.constant 0 : index
    %6 = memref.load %arg1[%c0_3] : memref<1xf32, #tpu.memory_space<smem>>
    %7 = vector.broadcast %6 : f32 to vector<1x128xf32>
    %8 = arith.addf %5, %7 : vector<1x128xf32>
    %9 = arith.negf %8 : vector<1x128xf32>
    %10 = math.exp %9 : vector<1x128xf32>
    %cst_4 = arith.constant 1.000000e+00 : f32
    %11 = vector.broadcast %cst_4 : f32 to vector<1x128xf32>
    %12 = arith.addf %11, %10 : vector<1x128xf32>
    %13 = arith.divf %11, %12 : vector<1x128xf32>
    %c0_5 = arith.constant 0 : index
    %c0_6 = arith.constant 0 : index
    %14 = vector.load %arg4[%c0_5, %c0_6] : memref<1x128xf32, #tpu.memory_space<vmem>>, vector<1x128xf32>
    tpu.vector_store %arg4[%c0_5, %c0_6], %13 {strides = array<i32>} : memref<1x128xf32, #tpu.memory_space<vmem>>, vector<1x128xf32>,
    return
  }
  func.func @transform_0(%arg0: i32, %arg1: memref<1xf32, #tpu.memory_space<smem>>) -> (i32, i32) {
    %c0_i32 = arith.constant 0 : i32
    %c0_i32_0 = arith.constant 0 : i32
    return %c0_i32, %arg0 : i32, i32
  }
  func.func @transform_1(%arg0: i32, %arg1: memref<1xf32, #tpu.memory_space<smem>>) -> (i32, i32) {
    %c0_i32 = arith.constant 0 : i32
    %c0_i32_0 = arith.constant 0 : i32
    %c0_i32_1 = arith.constant 0 : i32
    return %c0_i32, %c0_i32_0 : i32, i32
  }
  func.func @transform_2(%arg0: i32, %arg1: memref<1xf32, #tpu.memory_space<smem>>) -> (i32, i32) {
    %c0_i32 = arith.constant 0 : i32
    %c0_i32_0 = arith.constant 0 : i32
    return %c0_i32, %arg0 : i32, i32
  }
}

</mosaic_0001>

<bundles_post_ra>
// kernel: tpu_custom_call.1
= control target key start
LH: loop header
LB: loop body
LE: loop exit
PB: predicated region body
PF: predicated region fallthrough
CT: control target
= control target key end

     0   :  { %v112_v2 = vmov 0   ;;  %s173_s0 = inlined_call_operand.<no memory space> [shape: f32[1], index: 0, kind: input, shape index: {}]   ;;  %s174_s1 = inlined_call_operand.vmem [shape: f32[32,128], index: 1, kind: input, shape index: {}]   ;;  %s175_s2 = inlined_call_operand.vmem [shape: f32[32,1], index: 2, kind: input, shape index: {}]   ;;  %s176_s3 = inlined_call_operand.hbm [shape: f32[1,128], index: 3, kind: output, shape index: {}]  }
   0x1   :  { %v20_v0 = vld [vmem:[%s175_s2 + $0x10] sm:$0xff]  ;;  %v18_v1 = vld [vmem:[%s175_s2] sm:$0xff]  ;;  %83 = vset.pattern.permute.xlu1 %v112_v2  ;;  %82 = vset.pattern.permute.xlu0 %v112_v2 }
   0x2   :  { %34 = vperm.xlu1 %83, %v20_v0   ;;  %24 = vperm.xlu0 %82, %v18_v1  }
   0x3   :  { %9 = vsyncpa [#allocation5], 0  ;;  %v21_v3 = vld [vmem:[%s175_s2 + $0x18] sm:$0xff]  ;;  %v19_v4 = vld [vmem:[%s175_s2 + $0x8] sm:$0xff]  ;;  %v56_v25 = vstv %s173_s0 }
   0x4   :  { %v14_v7 = vld [vmem:[%s174_s1] sm:$0xff]  ;;  %v15_v8 = vld [vmem:[%s174_s1 + $0x8] sm:$0xff]  ;;  %v16_v9 = vld [vmem:[%s174_s1 + $0x10] sm:$0xff] }
   0x5   :  { %v17_v14 = vld [vmem:[%s174_s1 + $0x18] sm:$0xff]  ;;  %s113_s1 = smov [#allocation4]  }
   0x6   :  { %39 = vperm.xlu1 %83, %v21_v3   ;;  %29 = vperm.xlu0 %82, %v19_v4   ;;  %s71_s29 = sshll.u32 %s113_s1, 4  ;;  %s72_s29 = int_to_ptr.vmem [resolvable:$true] %s71_s29 }
   0x7   :  { %s88_s30 = scalar_lea.vmem %s72_s29, 16  ;;  %s92_s4 = scalar_lea.vmem %s72_s29, 32 }
   0x8   :  { %p89_p0 = scmp.ne.s32.totalorder %s72_s29, %s88_s30  ;;  %p93_p1 = scmp.lt.s32.totalorder %s72_s29, %s72_s29 }
   0x9   :  { %p94_p2 = scmp.lt.s32.totalorder %s92_s4, %s88_s30 }
   0xb   :  { %p95_p3 = por %p94_p2, %p93_p1 }
   0xd   :  { %p96_p4 = pnand %p95_p3, %p89_p0 }
  0x81   :  { %v35_v5 = vpop.permute.xlu1 %34  ;;  %v25_v6 = vpop.permute.xlu0 %24 }
  0x82   :  { %v42_v11 = vmul.f32 %v25_v6, %v14_v7  ;;  %v44_v15 = vmul.f32 %v35_v5, %v16_v9 }
  0x85   :  { %v30_v10 = vpop.permute.xlu0 %29  ;;  %v40_v13 = vpop.permute.xlu1 %39 }
  0x86   :  { %v43_v12 = vmul.f32 %v30_v10, %v15_v8  ;;  %v45_v17 = vmul.f32 %v40_v13, %v17_v14 }
  0x88   :  { %v46_v16 = vadd.f32 %v43_v12, %v42_v11 }
  0x8a   :  { %v47_v18 = vadd.f32 %v46_v16, %v44_v15 }
  0x8c   :  { %v48_v19 = vadd.f32 %v47_v18, %v45_v17 }
  0x8e   :  { %v49_v20 = vrot.slane %v48_v19, 4 }
  0x90   :  { %v50_v21 = vadd.f32 %v49_v20, %v48_v19 }
  0x92   :  { %v51_v22 = vrot.slane %v50_v21, 2 }
  0x94   :  { %v52_v23 = vadd.f32 %v51_v22, %v50_v21 }
  0x96   :  { %v53_v24 = vrot.slane %v52_v23, 1 }
  0x98   :  { %v54_v26 = vadd.f32 %v53_v24, %v52_v23 }
  0x9a   :  { %v57_v27 = vadd.f32 %v56_v25, %v54_v26 }
  0x9c   :  { %v79_v28 = vmul.f32 -1.442695, %v57_v27 }
  0x9e   :  { %84 = vpow2.f32 %v79_v28 }
  0xa8   :  { %v85_v29 = vpop.eup %84 }
  0xa9   :  { %v61_v30 = vadd.f32 1.0, %v85_v29 }
  0xab   :  { %86 = vrcp.f32 %v61_v30 }
  0xb5   :  { %v87_v31 = vpop.eup %86 }
  0xb6   :  { %64 = vst [vmem:[#allocation4] sm:$0x1] %v87_v31 }
  0xb7   :  { %99 = shalt.err (!%p96_p4)
}
  0xb8   :  { %s100_s6 = scalar_lea.hbm %s176_s3, 16 }
  0xb9   :  { %p101_p5 = scmp.ne.s32.totalorder %s176_s3, %s100_s6  ;;  %p104_p6 = scmp.lt.u32.totalorder %s100_s6, %s176_s3 }
  0xbb   :  { %p106_p7 = pnand %p104_p6, %p101_p5 }
  0xbd   :  { %109 = shalt.err (!%p106_p7)
}
  0xbe   :  { %74 = dma.vmem_to_hbm [thread:$0]  %s72_s29, 16, %s176_s3, [#allocation5]  }
  0xbf   :  { %110 = dma.done.wait [#allocation5], 16  }
  0xc0   :  { %111 = vsyncadd [#allocation5], 4294967280 }
  0xc1   :  { %78 = vsyncpa [#allocation5], 1 }

</bundles_post_ra>
